<compile_context>
chip_gen: v7x
topology: tpu7x:2x2x1
jax: 0.10.0
libtpu: 0.0.40
codegen_flags: <defaults>
</compile_context>

<pallas_src>
import math
from functools import partial

import jax
import jax.numpy as jnp
from jax.experimental import pallas as pl
from jax.experimental.pallas import tpu as pltpu


def _double_kernel(x_ref, o_ref):
    # Elementwise hot path: out = x + x (one vadd per vreg on the VPU).
    x = x_ref[...]
    o_ref[...] = x + x


_LANES = 1024                                # lane-dense width (multiple of 128)
_SUBLANES = 8
_TILE_ELEMS = _SUBLANES * _LANES             # 8192: padding unit -> rows % 8 == 0
_SINGLE_BLOCK_MAX_BYTES = 2 * 1024 * 1024    # below this: one VMEM-resident block
_BLOCK_ROWS = 512                            # 512x1024 f32 = 2 MiB per grid block


def _pallas_double_slab(slab, use_grid):
    """slab: (rows, _LANES), rows % 8 == 0. Returns slab + slab via Pallas."""
    if not use_grid:
        # Whole array as one VMEM-resident block: single DMA each way,
        # zero per-step grid overhead.
        return pl.pallas_call(
            _double_kernel,
            out_shape=jax.ShapeDtypeStruct(slab.shape, slab.dtype),
            in_specs=[pl.BlockSpec(memory_space=pltpu.MemorySpace.VMEM)],
            out_specs=pl.BlockSpec(memory_space=pltpu.MemorySpace.VMEM),
            input_output_aliases={0: 0},
        )(slab)

    rows = slab.shape[0]
    grid = (pl.cdiv(rows, _BLOCK_ROWS),)
    return pl.pallas_call(
        _double_kernel,
        out_shape=jax.ShapeDtypeStruct(slab.shape, slab.dtype),
        grid=grid,
        in_specs=[pl.BlockSpec((_BLOCK_ROWS, _LANES), lambda i: (i, 0))],
        out_specs=pl.BlockSpec((_BLOCK_ROWS, _LANES), lambda i: (i, 0)),
        input_output_aliases={0: 0},
        compiler_params=pltpu.CompilerParams(
            # Parallel leading axis: sharded across v7x's 2 TensorCores,
            # no-op on v5e/v6e (single TC); auto-pipeline hides writeback.
            dimension_semantics=("parallel",),
        ),
    )(slab)


@partial(jax.jit, donate_argnums=(0,))
def custom_add(x):
    """Pallas implementation of CustomClassOp_Add.forward: add(input, input)."""
    orig_shape = x.shape
    n = x.size
    nbytes = n * x.dtype.itemsize
    use_grid = nbytes > _SINGLE_BLOCK_MAX_BYTES

    # Flatten + pad to a lane/sublane-dense (rows, 1024) slab. For the gridded
    # path pad to a whole block so every grid step is a full dense tile.
    pad_unit = _BLOCK_ROWS * _LANES if use_grid else _TILE_ELEMS
    pad = (-n) % pad_unit

    flat = x.reshape(-1)
    if pad:
        flat = jnp.pad(flat, (0, pad))
    slab = flat.reshape(-1, _LANES)

    out_slab = _pallas_double_slab(slab, use_grid)

    out = out_slab.reshape(-1)
    if pad:
        out = out[:n]
    return out.reshape(orig_shape)


def make_unused_weight(key):
    """Deterministic stand-in for the (unused) Parameter(8, 10, 1024) with
    kaiming_uniform_(a=sqrt(5)) init — structural fidelity only."""
    shape = (8, 10, 1024)
    fan_in = shape[1] * shape[2]
    gain = math.sqrt(2.0 / (1.0 + 5.0))  # a = sqrt(5)
    bound = gain * math.sqrt(3.0 / fan_in)
    return jax.random.uniform(key, shape, jnp.float32, minval=-bound, maxval=bound)


class CustomModel:
    """JAX mirror of the PyTorch CustomModel: forward(input) = input + input."""

    def __init__(self):
        # The PyTorch module holds an unused parameter; construct it lazily so
        # the forward path never pays for it.
        self._weight = None

    @property
    def weight(self):
        if self._weight is None:
            self._weight = make_unused_weight(jax.random.PRNGKey(1))
        return self._weight

    def __call__(self, x):
        return custom_add(x)


if __name__ == "__main__":
    key = jax.random.PRNGKey(0)

    # Input shape consistent with the module's parameter shape (8, 10, 1024).
    x = jax.random.normal(key, (8, 10, 1024), dtype=jnp.float32)

    # Reference computed BEFORE the donating call consumes x's buffer.
    expected = jax.block_until_ready(x + x)

    model = CustomModel()
    out = jax.block_until_ready(model(x))

    assert out.shape == (8, 10, 1024)
    assert out.dtype == jnp.float32
    assert jnp.allclose(out, expected, atol=0.0, rtol=0.0)

    print("KERNEL_OK")
</pallas_src>

<mosaic_0001>
module attributes {stable_mosaic.version = 11 : i64} {
  func.func @_double_kernel(%arg0: memref<80x1024xf32, #tpu.memory_space<vmem>>, %arg1: memref<80x1024xf32, #tpu.memory_space<vmem>>) attributes {dimension_semantics = [], scalar_prefetch = 0 : i64, scratch_operands = 0 : i64, tpu.core_type = #tpu.core_type<tc>} {
    %c0 = arith.constant 0 : index
    %c0_0 = arith.constant 0 : index
    %0 = vector.load %arg0[%c0, %c0_0] : memref<80x1024xf32, #tpu.memory_space<vmem>>, vector<80x1024xf32>
    %1 = arith.addf %0, %0 : vector<80x1024xf32>
    %c0_1 = arith.constant 0 : index
    %c0_2 = arith.constant 0 : index
    %2 = vector.load %arg1[%c0_1, %c0_2] : memref<80x1024xf32, #tpu.memory_space<vmem>>, vector<80x1024xf32>
    tpu.vector_store %arg1[%c0_1, %c0_2], %1 {strides = array<i32>} : memref<80x1024xf32, #tpu.memory_space<vmem>>, vector<80x1024xf32>,
    return
  }
}

</mosaic_0001>

<bundles_post_ra>
// kernel: custom_add.1
= control target key start
LH: loop header
LB: loop body
LE: loop exit
PB: predicated region body
PF: predicated region fallthrough
CT: control target
= control target key end

     0   :  { %s742_s0 = inlined_call_operand.vmem [shape: f32[80,1024], index: 0, kind: input, shape index: {}, may-alias: {0,1}]   ;;  %s743_s1 = inlined_call_operand.vmem [shape: f32[80,1024], index: 1, kind: output, shape index: {}, may-alias: {0,1}]  }
   0x1   :  { %v8_v0 = vld [vmem:[%s742_s0] sm:$0xff]  ;;  %v9_v1 = vld [vmem:[%s742_s0 + $0x8] sm:$0xff]  ;;  %v10_v2 = vld [vmem:[%s742_s0 + $0x10] sm:$0xff] }
   0x2   :  { %v88_v3 = vadd.f32 %v8_v0, %v8_v0  ;;  %v89_v4 = vadd.f32 %v9_v1, %v9_v1  ;;  %v90_v5 = vadd.f32 %v10_v2, %v10_v2  ;;  %v11_v6 = vld [vmem:[%s742_s0 + $0x18] sm:$0xff]  ;;  %v12_v7 = vld [vmem:[%s742_s0 + $0x20] sm:$0xff]  ;;  %v13_v8 = vld [vmem:[%s742_s0 + $0x28] sm:$0xff] }
   0x3   :  { %v91_v9 = vadd.f32 %v11_v6, %v11_v6  ;;  %v92_v10 = vadd.f32 %v12_v7, %v12_v7  ;;  %v93_v11 = vadd.f32 %v13_v8, %v13_v8  ;;  %v14_v12 = vld [vmem:[%s742_s0 + $0x30] sm:$0xff]  ;;  %v15_v13 = vld [vmem:[%s742_s0 + $0x38] sm:$0xff]  ;;  %v16_v14 = vld [vmem:[%s742_s0 + $0x40] sm:$0xff] }
   0x4   :  { %168 = vst [vmem:[%s743_s1] sm:$0xff] %v88_v3  ;;  %169 = vst [vmem:[%s743_s1 + $0x8] sm:$0xff] %v89_v4  ;;  %v94_v15 = vadd.f32 %v14_v12, %v14_v12  ;;  %v95_v16 = vadd.f32 %v15_v13, %v15_v13  ;;  %v96_v17 = vadd.f32 %v16_v14, %v16_v14 }
   0x5   :  { %170 = vst [vmem:[%s743_s1 + $0x10] sm:$0xff] %v90_v5 }
   0xc   :  { %v17_v18 = vld [vmem:[%s742_s0 + $0x48] sm:$0xff]  ;;  %v18_v19 = vld [vmem:[%s742_s0 + $0x50] sm:$0xff]  ;;  %v19_v20 = vld [vmem:[%s742_s0 + $0x58] sm:$0xff] }
   0xd   :  { %171 = vst [vmem:[%s743_s1 + $0x18] sm:$0xff] %v91_v9  ;;  %172 = vst [vmem:[%s743_s1 + $0x20] sm:$0xff] %v92_v10  ;;  %v97_v21 = vadd.f32 %v17_v18, %v17_v18  ;;  %v98_v22 = vadd.f32 %v18_v19, %v18_v19  ;;  %v99_v23 = vadd.f32 %v19_v20, %v19_v20 }
   0xe   :  { %173 = vst [vmem:[%s743_s1 + $0x28] sm:$0xff] %v93_v11 }
  0x15   :  { %v20_v24 = vld [vmem:[%s742_s0 + $0x60] sm:$0xff]  ;;  %v21_v25 = vld [vmem:[%s742_s0 + $0x68] sm:$0xff]  ;;  %v22_v26 = vld [vmem:[%s742_s0 + $0x70] sm:$0xff] }
  0x16   :  { %174 = vst [vmem:[%s743_s1 + $0x30] sm:$0xff] %v94_v15  ;;  %175 = vst [vmem:[%s743_s1 + $0x38] sm:$0xff] %v95_v16  ;;  %v100_v27 = vadd.f32 %v20_v24, %v20_v24  ;;  %v101_v28 = vadd.f32 %v21_v25, %v21_v25  ;;  %v102_v29 = vadd.f32 %v22_v26, %v22_v26 }
  0x17   :  { %176 = vst [vmem:[%s743_s1 + $0x40] sm:$0xff] %v96_v17 }
  0x1e   :  { %v23_v30 = vld [vmem:[%s742_s0 + $0x78] sm:$0xff]  ;;  %v24_v31 = vld [vmem:[%s742_s0 + $0x80] sm:$0xff]  ;;  %v25_v32 = vld [vmem:[%s742_s0 + $0x88] sm:$0xff] }
  0x1f   :  { %177 = vst [vmem:[%s743_s1 + $0x48] sm:$0xff] %v97_v21  ;;  %178 = vst [vmem:[%s743_s1 + $0x50] sm:$0xff] %v98_v22  ;;  %v103_v33 = vadd.f32 %v23_v30, %v23_v30  ;;  %v104_v34 = vadd.f32 %v24_v31, %v24_v31  ;;  %v105_v35 = vadd.f32 %v25_v32, %v25_v32 }
  0x20   :  { %179 = vst [vmem:[%s743_s1 + $0x58] sm:$0xff] %v99_v23 }
  0x27   :  { %v26_v36 = vld [vmem:[%s742_s0 + $0x90] sm:$0xff]  ;;  %v27_v37 = vld [vmem:[%s742_s0 + $0x98] sm:$0xff]  ;;  %v28_v38 = vld [vmem:[%s742_s0 + $0xa0] sm:$0xff] }
  0x28   :  { %180 = vst [vmem:[%s743_s1 + $0x60] sm:$0xff] %v100_v27  ;;  %181 = vst [vmem:[%s743_s1 + $0x68] sm:$0xff] %v101_v28  ;;  %v106_v39 = vadd.f32 %v26_v36, %v26_v36  ;;  %v107_v40 = vadd.f32 %v27_v37, %v27_v37  ;;  %v108_v41 = vadd.f32 %v28_v38, %v28_v38 }
  0x29   :  { %182 = vst [vmem:[%s743_s1 + $0x70] sm:$0xff] %v102_v29 }
  0x30   :  { %v29_v42 = vld [vmem:[%s742_s0 + $0xa8] sm:$0xff]  ;;  %v30_v43 = vld [vmem:[%s742_s0 + $0xb0] sm:$0xff]  ;;  %v31_v44 = vld [vmem:[%s742_s0 + $0xb8] sm:$0xff] }
  0x31   :  { %183 = vst [vmem:[%s743_s1 + $0x78] sm:$0xff] %v103_v33  ;;  %184 = vst [vmem:[%s743_s1 + $0x80] sm:$0xff] %v104_v34  ;;  %v109_v45 = vadd.f32 %v29_v42, %v29_v42  ;;  %v110_v46 = vadd.f32 %v30_v43, %v30_v43  ;;  %v111_v47 = vadd.f32 %v31_v44, %v31_v44 }
  0x32   :  { %185 = vst [vmem:[%s743_s1 + $0x88] sm:$0xff] %v105_v35 }
  0x39   :  { %v32_v48 = vld [vmem:[%s742_s0 + $0xc0] sm:$0xff]  ;;  %v33_v49 = vld [vmem:[%s742_s0 + $0xc8] sm:$0xff]  ;;  %v34_v50 = vld [vmem:[%s742_s0 + $0xd0] sm:$0xff] }
  0x3a   :  { %186 = vst [vmem:[%s743_s1 + $0x90] sm:$0xff] %v106_v39  ;;  %187 = vst [vmem:[%s743_s1 + $0x98] sm:$0xff] %v107_v40  ;;  %v112_v51 = vadd.f32 %v32_v48, %v32_v48  ;;  %v113_v52 = vadd.f32 %v33_v49, %v33_v49  ;;  %v114_v53 = vadd.f32 %v34_v50, %v34_v50 }
  0x3b   :  { %188 = vst [vmem:[%s743_s1 + $0xa0] sm:$0xff] %v108_v41 }
  0x42   :  { %v35_v54 = vld [vmem:[%s742_s0 + $0xd8] sm:$0xff]  ;;  %v36_v55 = vld [vmem:[%s742_s0 + $0xe0] sm:$0xff]  ;;  %v37_v56 = vld [vmem:[%s742_s0 + $0xe8] sm:$0xff] }
  0x43   :  { %189 = vst [vmem:[%s743_s1 + $0xa8] sm:$0xff] %v109_v45  ;;  %190 = vst [vmem:[%s743_s1 + $0xb0] sm:$0xff] %v110_v46  ;;  %v115_v57 = vadd.f32 %v35_v54, %v35_v54  ;;  %v116_v58 = vadd.f32 %v36_v55, %v36_v55  ;;  %v117_v59 = vadd.f32 %v37_v56, %v37_v56 }
  0x44   :  { %191 = vst [vmem:[%s743_s1 + $0xb8] sm:$0xff] %v111_v47 }
  0x4b   :  { %v38_v60 = vld [vmem:[%s742_s0 + $0xf0] sm:$0xff]  ;;  %v39_v61 = vld [vmem:[%s742_s0 + $0xf8] sm:$0xff]  ;;  %v40_v62 = vld [vmem:[%s742_s0 + $0x100] sm:$0xff] }
  0x4c   :  { %192 = vst [vmem:[%s743_s1 + $0xc0] sm:$0xff] %v112_v51  ;;  %193 = vst [vmem:[%s743_s1 + $0xc8] sm:$0xff] %v113_v52  ;;  %v118_v63 = vadd.f32 %v38_v60, %v38_v60  ;;  %v119_v0 = vadd.f32 %v39_v61, %v39_v61  ;;  %v120_v1 = vadd.f32 %v40_v62, %v40_v62 }
  0x4d   :  { %194 = vst [vmem:[%s743_s1 + $0xd0] sm:$0xff] %v114_v53 }
  0x54   :  { %v41_v2 = vld [vmem:[%s742_s0 + $0x108] sm:$0xff]  ;;  %v42_v3 = vld [vmem:[%s742_s0 + $0x110] sm:$0xff]  ;;  %v43_v4 = vld [vmem:[%s742_s0 + $0x118] sm:$0xff] }
  0x55   :  { %195 = vst [vmem:[%s743_s1 + $0xd8] sm:$0xff] %v115_v57  ;;  %196 = vst [vmem:[%s743_s1 + $0xe0] sm:$0xff] %v116_v58  ;;  %v121_v5 = vadd.f32 %v41_v2, %v41_v2  ;;  %v122_v6 = vadd.f32 %v42_v3, %v42_v3  ;;  %v123_v7 = vadd.f32 %v43_v4, %v43_v4 }
  0x56   :  { %197 = vst [vmem:[%s743_s1 + $0xe8] sm:$0xff] %v117_v59 }
  0x5d   :  { %v44_v8 = vld [vmem:[%s742_s0 + $0x120] sm:$0xff]  ;;  %v45_v9 = vld [vmem:[%s742_s0 + $0x128] sm:$0xff]  ;;  %v46_v10 = vld [vmem:[%s742_s0 + $0x130] sm:$0xff] }
  0x5e   :  { %198 = vst [vmem:[%s743_s1 + $0xf0] sm:$0xff] %v118_v63  ;;  %199 = vst [vmem:[%s743_s1 + $0xf8] sm:$0xff] %v119_v0  ;;  %v124_v11 = vadd.f32 %v44_v8, %v44_v8  ;;  %v125_v12 = vadd.f32 %v45_v9, %v45_v9  ;;  %v126_v13 = vadd.f32 %v46_v10, %v46_v10 }
  0x5f   :  { %200 = vst [vmem:[%s743_s1 + $0x100] sm:$0xff] %v120_v1 }
  0x66   :  { %v47_v14 = vld [vmem:[%s742_s0 + $0x138] sm:$0xff]  ;;  %v48_v15 = vld [vmem:[%s742_s0 + $0x140] sm:$0xff]  ;;  %v49_v16 = vld [vmem:[%s742_s0 + $0x148] sm:$0xff] }
  0x67   :  { %201 = vst [vmem:[%s743_s1 + $0x108] sm:$0xff] %v121_v5  ;;  %202 = vst [vmem:[%s743_s1 + $0x110] sm:$0xff] %v122_v6  ;;  %v127_v17 = vadd.f32 %v47_v14, %v47_v14  ;;  %v128_v18 = vadd.f32 %v48_v15, %v48_v15  ;;  %v129_v19 = vadd.f32 %v49_v16, %v49_v16 }
  0x68   :  { %203 = vst [vmem:[%s743_s1 + $0x118] sm:$0xff] %v123_v7 }
  0x6f   :  { %v50_v20 = vld [vmem:[%s742_s0 + $0x150] sm:$0xff]  ;;  %v51_v21 = vld [vmem:[%s742_s0 + $0x158] sm:$0xff]  ;;  %v52_v22 = vld [vmem:[%s742_s0 + $0x160] sm:$0xff] }
  0x70   :  { %204 = vst [vmem:[%s743_s1 + $0x120] sm:$0xff] %v124_v11  ;;  %205 = vst [vmem:[%s743_s1 + $0x128] sm:$0xff] %v125_v12  ;;  %v130_v23 = vadd.f32 %v50_v20, %v50_v20  ;;  %v131_v24 = vadd.f32 %v51_v21, %v51_v21  ;;  %v132_v25 = vadd.f32 %v52_v22, %v52_v22 }
  0x71   :  { %206 = vst [vmem:[%s743_s1 + $0x130] sm:$0xff] %v126_v13 }
  0x78   :  { %v53_v26 = vld [vmem:[%s742_s0 + $0x168] sm:$0xff]  ;;  %v54_v27 = vld [vmem:[%s742_s0 + $0x170] sm:$0xff]  ;;  %v55_v28 = vld [vmem:[%s742_s0 + $0x178] sm:$0xff] }
  0x79   :  { %207 = vst [vmem:[%s743_s1 + $0x138] sm:$0xff] %v127_v17  ;;  %208 = vst [vmem:[%s743_s1 + $0x140] sm:$0xff] %v128_v18  ;;  %v133_v29 = vadd.f32 %v53_v26, %v53_v26  ;;  %v134_v30 = vadd.f32 %v54_v27, %v54_v27  ;;  %v135_v31 = vadd.f32 %v55_v28, %v55_v28 }
  0x7a   :  { %209 = vst [vmem:[%s743_s1 + $0x148] sm:$0xff] %v129_v19 }
  0x81   :  { %v56_v32 = vld [vmem:[%s742_s0 + $0x180] sm:$0xff]  ;;  %v57_v33 = vld [vmem:[%s742_s0 + $0x188] sm:$0xff]  ;;  %v58_v34 = vld [vmem:[%s742_s0 + $0x190] sm:$0xff] }
  0x82   :  { %210 = vst [vmem:[%s743_s1 + $0x150] sm:$0xff] %v130_v23  ;;  %211 = vst [vmem:[%s743_s1 + $0x158] sm:$0xff] %v131_v24  ;;  %v136_v35 = vadd.f32 %v56_v32, %v56_v32  ;;  %v137_v36 = vadd.f32 %v57_v33, %v57_v33  ;;  %v138_v37 = vadd.f32 %v58_v34, %v58_v34 }
  0x83   :  { %212 = vst [vmem:[%s743_s1 + $0x160] sm:$0xff] %v132_v25 }
  0x8a   :  { %v59_v38 = vld [vmem:[%s742_s0 + $0x198] sm:$0xff]  ;;  %v60_v39 = vld [vmem:[%s742_s0 + $0x1a0] sm:$0xff]  ;;  %v61_v40 = vld [vmem:[%s742_s0 + $0x1a8] sm:$0xff] }
  0x8b   :  { %213 = vst [vmem:[%s743_s1 + $0x168] sm:$0xff] %v133_v29  ;;  %214 = vst [vmem:[%s743_s1 + $0x170] sm:$0xff] %v134_v30  ;;  %v139_v41 = vadd.f32 %v59_v38, %v59_v38  ;;  %v140_v42 = vadd.f32 %v60_v39, %v60_v39  ;;  %v141_v43 = vadd.f32 %v61_v40, %v61_v40 }
  0x8c   :  { %215 = vst [vmem:[%s743_s1 + $0x178] sm:$0xff] %v135_v31 }
  0x93   :  { %v62_v44 = vld [vmem:[%s742_s0 + $0x1b0] sm:$0xff]  ;;  %v63_v45 = vld [vmem:[%s742_s0 + $0x1b8] sm:$0xff]  ;;  %v64_v46 = vld [vmem:[%s742_s0 + $0x1c0] sm:$0xff] }
  0x94   :  { %216 = vst [vmem:[%s743_s1 + $0x180] sm:$0xff] %v136_v35  ;;  %217 = vst [vmem:[%s743_s1 + $0x188] sm:$0xff] %v137_v36  ;;  %v142_v47 = vadd.f32 %v62_v44, %v62_v44  ;;  %v143_v48 = vadd.f32 %v63_v45, %v63_v45  ;;  %v144_v49 = vadd.f32 %v64_v46, %v64_v46 }
  0x95   :  { %218 = vst [vmem:[%s743_s1 + $0x190] sm:$0xff] %v138_v37 }
  0x9c   :  { %v65_v50 = vld [vmem:[%s742_s0 + $0x1c8] sm:$0xff]  ;;  %v66_v51 = vld [vmem:[%s742_s0 + $0x1d0] sm:$0xff]  ;;  %v67_v52 = vld [vmem:[%s742_s0 + $0x1d8] sm:$0xff] }
  0x9d   :  { %219 = vst [vmem:[%s743_s1 + $0x198] sm:$0xff] %v139_v41  ;;  %220 = vst [vmem:[%s743_s1 + $0x1a0] sm:$0xff] %v140_v42  ;;  %v145_v53 = vadd.f32 %v65_v50, %v65_v50  ;;  %v146_v54 = vadd.f32 %v66_v51, %v66_v51  ;;  %v147_v55 = vadd.f32 %v67_v52, %v67_v52 }
  0x9e   :  { %221 = vst [vmem:[%s743_s1 + $0x1a8] sm:$0xff] %v141_v43 }
  0xa5   :  { %v68_v56 = vld [vmem:[%s742_s0 + $0x1e0] sm:$0xff]  ;;  %v69_v57 = vld [vmem:[%s742_s0 + $0x1e8] sm:$0xff]  ;;  %v70_v58 = vld [vmem:[%s742_s0 + $0x1f0] sm:$0xff] }
  0xa6   :  { %222 = vst [vmem:[%s743_s1 + $0x1b0] sm:$0xff] %v142_v47  ;;  %223 = vst [vmem:[%s743_s1 + $0x1b8] sm:$0xff] %v143_v48  ;;  %v148_v59 = vadd.f32 %v68_v56, %v68_v56  ;;  %v149_v60 = vadd.f32 %v69_v57, %v69_v57  ;;  %v150_v61 = vadd.f32 %v70_v58, %v70_v58 }
  0xa7   :  { %224 = vst [vmem:[%s743_s1 + $0x1c0] sm:$0xff] %v144_v49 }
  0xae   :  { %v71_v62 = vld [vmem:[%s742_s0 + $0x1f8] sm:$0xff]  ;;  %v72_v63 = vld [vmem:[%s742_s0 + $0x200] sm:$0xff]  ;;  %v73_v0 = vld [vmem:[%s742_s0 + $0x208] sm:$0xff] }
  0xaf   :  { %225 = vst [vmem:[%s743_s1 + $0x1c8] sm:$0xff] %v145_v53  ;;  %226 = vst [vmem:[%s743_s1 + $0x1d0] sm:$0xff] %v146_v54  ;;  %v151_v1 = vadd.f32 %v71_v62, %v71_v62  ;;  %v152_v2 = vadd.f32 %v72_v63, %v72_v63  ;;  %v153_v3 = vadd.f32 %v73_v0, %v73_v0 }
  0xb0   :  { %227 = vst [vmem:[%s743_s1 + $0x1d8] sm:$0xff] %v147_v55 }
  0xb7   :  { %v74_v4 = vld [vmem:[%s742_s0 + $0x210] sm:$0xff]  ;;  %v75_v5 = vld [vmem:[%s742_s0 + $0x218] sm:$0xff]  ;;  %v76_v6 = vld [vmem:[%s742_s0 + $0x220] sm:$0xff] }
  0xb8   :  { %228 = vst [vmem:[%s743_s1 + $0x1e0] sm:$0xff] %v148_v59  ;;  %229 = vst [vmem:[%s743_s1 + $0x1e8] sm:$0xff] %v149_v60  ;;  %v154_v7 = vadd.f32 %v74_v4, %v74_v4  ;;  %v155_v8 = vadd.f32 %v75_v5, %v75_v5  ;;  %v156_v9 = vadd.f32 %v76_v6, %v76_v6 }
  0xb9   :  { %230 = vst [vmem:[%s743_s1 + $0x1f0] sm:$0xff] %v150_v61 }
  0xc0   :  { %v77_v10 = vld [vmem:[%s742_s0 + $0x228] sm:$0xff]  ;;  %v78_v11 = vld [vmem:[%s742_s0 + $0x230] sm:$0xff]  ;;  %v79_v12 = vld [vmem:[%s742_s0 + $0x238] sm:$0xff] }
  0xc1   :  { %231 = vst [vmem:[%s743_s1 + $0x1f8] sm:$0xff] %v151_v1  ;;  %232 = vst [vmem:[%s743_s1 + $0x200] sm:$0xff] %v152_v2  ;;  %v157_v13 = vadd.f32 %v77_v10, %v77_v10  ;;  %v158_v14 = vadd.f32 %v78_v11, %v78_v11  ;;  %v159_v15 = vadd.f32 %v79_v12, %v79_v12 }
  0xc2   :  { %233 = vst [vmem:[%s743_s1 + $0x208] sm:$0xff] %v153_v3 }
  0xc9   :  { %v80_v16 = vld [vmem:[%s742_s0 + $0x240] sm:$0xff]  ;;  %v81_v17 = vld [vmem:[%s742_s0 + $0x248] sm:$0xff]  ;;  %v82_v18 = vld [vmem:[%s742_s0 + $0x250] sm:$0xff] }
  0xca   :  { %234 = vst [vmem:[%s743_s1 + $0x210] sm:$0xff] %v154_v7  ;;  %235 = vst [vmem:[%s743_s1 + $0x218] sm:$0xff] %v155_v8  ;;  %v160_v19 = vadd.f32 %v80_v16, %v80_v16  ;;  %v161_v20 = vadd.f32 %v81_v17, %v81_v17  ;;  %v162_v21 = vadd.f32 %v82_v18, %v82_v18 }
  0xcb   :  { %236 = vst [vmem:[%s743_s1 + $0x220] sm:$0xff] %v156_v9 }
  0xd2   :  { %v83_v22 = vld [vmem:[%s742_s0 + $0x258] sm:$0xff]  ;;  %v84_v23 = vld [vmem:[%s742_s0 + $0x260] sm:$0xff]  ;;  %v85_v24 = vld [vmem:[%s742_s0 + $0x268] sm:$0xff] }
  0xd3   :  { %237 = vst [vmem:[%s743_s1 + $0x228] sm:$0xff] %v157_v13  ;;  %238 = vst [vmem:[%s743_s1 + $0x230] sm:$0xff] %v158_v14  ;;  %v163_v25 = vadd.f32 %v83_v22, %v83_v22  ;;  %v164_v26 = vadd.f32 %v84_v23, %v84_v23  ;;  %v165_v27 = vadd.f32 %v85_v24, %v85_v24 }
  0xd4   :  { %239 = vst [vmem:[%s743_s1 + $0x238] sm:$0xff] %v159_v15 }
  0xdb   :  { %v86_v28 = vld [vmem:[%s742_s0 + $0x270] sm:$0xff]  ;;  %v87_v29 = vld [vmem:[%s742_s0 + $0x278] sm:$0xff] }
  0xdc   :  { %240 = vst [vmem:[%s743_s1 + $0x240] sm:$0xff] %v160_v19  ;;  %241 = vst [vmem:[%s743_s1 + $0x248] sm:$0xff] %v161_v20  ;;  %v166_v30 = vadd.f32 %v86_v28, %v86_v28  ;;  %v167_v31 = vadd.f32 %v87_v29, %v87_v29 }
  0xdd   :  { %242 = vst [vmem:[%s743_s1 + $0x250] sm:$0xff] %v162_v21  ;;  %243 = vst [vmem:[%s743_s1 + $0x258] sm:$0xff] %v163_v25 }
  0xde   :  { %244 = vst [vmem:[%s743_s1 + $0x260] sm:$0xff] %v164_v26  ;;  %245 = vst [vmem:[%s743_s1 + $0x268] sm:$0xff] %v165_v27 }
  0xdf   :  { %246 = vst [vmem:[%s743_s1 + $0x270] sm:$0xff] %v166_v30  ;;  %247 = vst [vmem:[%s743_s1 + $0x278] sm:$0xff] %v167_v31 }

</bundles_post_ra>
